<compile_context>
chip_gen: v6e
topology: v6e:2x2x1
jax: 0.10.0
libtpu: 0.0.40
codegen_flags: <defaults>
</compile_context>

<pallas_src>
import functools
import math

import jax
import jax.numpy as jnp
from jax.experimental import pallas as pl
from jax.experimental.pallas import tpu as pltpu


def _pick_tile(n, cap, mult):
    """Largest tile <= cap that divides n and is a multiple of `mult`
    (falls back to the full dimension, which is always a legal block)."""
    if n <= cap:
        return n
    t = cap - cap % mult
    while t >= mult:
        if n % t == 0:
            return t
        t -= mult
    return n


# --------------------- Kernel A: LayerNorm + fused projections ----------------
def _proj_kernel(x_ref, gamma_ref, beta_ref, w_ref, qkvg_ref, b_ref, *, n_qkvg):
    x = x_ref[...]                                    # (TM, C) f32
    mu = jnp.mean(x, axis=-1, keepdims=True)
    xc = x - mu
    var = jnp.mean(xc * xc, axis=-1, keepdims=True)   # biased var (torch LayerNorm)
    ln = xc * jax.lax.rsqrt(var + 1e-5) * gamma_ref[...] + beta_ref[...]

    # One wide MXU matmul for q|k|v|g|bias (bf16 operands, f32 accumulation).
    proj = jnp.dot(ln.astype(jnp.bfloat16), w_ref[...],
                   preferred_element_type=jnp.float32)      # (TM, 4*H*D + H)
    qkvg_ref[...] = proj[:, :n_qkvg].astype(jnp.bfloat16)   # lane-dense (TM, 4*H*D)
    b_ref[...] = proj[:, n_qkvg:]                           # (TM, H) f32


def projections_pallas(x_flat, gamma, beta, w_all, *, n_qkvg, tm_cap=512):
    M, C = x_flat.shape
    W = w_all.shape[1]
    tm = _pick_tile(M, tm_cap, 8)

    def const2(shape):
        # Constant index map -> block is fetched once and stays resident.
        return pl.BlockSpec(shape, lambda i: (0, 0))

    kern = functools.partial(_proj_kernel, n_qkvg=n_qkvg)
    return pl.pallas_call(
        kern,
        out_shape=[jax.ShapeDtypeStruct((M, n_qkvg), jnp.bfloat16),
                   jax.ShapeDtypeStruct((M, W - n_qkvg), jnp.float32)],
        grid=(M // tm,),
        in_specs=[
            pl.BlockSpec((tm, C), lambda i: (i, 0)),
            const2((1, C)), const2((1, C)),          # gamma / beta
            const2((C, W)),                          # fused [Wq|Wk|Wv|Wg|Wb]
        ],
        out_specs=[pl.BlockSpec((tm, n_qkvg), lambda i: (i, 0)),
                   pl.BlockSpec((tm, W - n_qkvg), lambda i: (i, 0))],
        compiler_params=pltpu.CompilerParams(
            dimension_semantics=("parallel",),
            vmem_limit_bytes=32 * 1024 * 1024),
    )(x_flat, gamma.reshape(1, C), beta.reshape(1, C), w_all)


# ------------------ Kernel B: per-column attention + out projection -----------
def _attn_kernel(qkvg_ref, bias_ref, wo_ref, o_ref, slab_ref, *,
                 num_heads, head_dim, scale, tj):
    ni = qkvg_ref.shape[1]
    hd = num_heads * head_dim
    c = o_ref.shape[-1]

    for h in range(num_heads):                 # all heads in-body (no head grid axis)
        bias_h = bias_ref[h]                   # (Ni, Ni) f32, resident in VMEM
        for jj in range(tj):                   # columns of this block (static unroll)
            col = qkvg_ref[jj]                 # (Ni, 4*H*D) bf16
            q = col[:, 0 * hd + h * head_dim: 0 * hd + (h + 1) * head_dim]
            k = col[:, 1 * hd + h * head_dim: 1 * hd + (h + 1) * head_dim]
            v = col[:, 2 * hd + h * head_dim: 2 * hd + (h + 1) * head_dim]
            g = col[:, 3 * hd + h * head_dim: 3 * hd + (h + 1) * head_dim]

            s = jax.lax.dot_general(q, k, (((1,), (1,)), ((), ())),
                                    preferred_element_type=jnp.float32)
            s = s * scale + bias_h             # (Ni, Ni) f32
            s = s - jnp.max(s, axis=-1, keepdims=True)
            p = jnp.exp(s)
            p = p * pl.reciprocal(jnp.sum(p, axis=-1, keepdims=True), approx=True)

            attn = jnp.dot(p.astype(jnp.bfloat16), v,
                           preferred_element_type=jnp.float32)   # (Ni, D) f32
            gated = g.astype(jnp.float32) * attn                 # no sigmoid (matches module)
            slab_ref[jj, :, h * head_dim:(h + 1) * head_dim] = gated.astype(jnp.bfloat16)

    # ONE wide output projection per column block (contraction K = H*D).
    gated_all = slab_ref[...]                                    # (tj, Ni, H*D) bf16
    out = jnp.dot(gated_all.reshape(tj * ni, hd), wo_ref[...],
                  preferred_element_type=jnp.float32)            # (tj*Ni, C) f32
    o_ref[...] = out.reshape(tj, ni, c)


def attention_pallas(qkvg3, bias_hm, wo, *, num_heads, head_dim, tj_cap=8):
    Nj, Ni, HD4 = qkvg3.shape
    H = num_heads
    HD = H * head_dim
    C = wo.shape[1]
    tj = _pick_tile(Nj, tj_cap, 8)

    kern = functools.partial(_attn_kernel, num_heads=H, head_dim=head_dim,
                             scale=1.0 / math.sqrt(head_dim), tj=tj)
    return pl.pallas_call(
        kern,
        out_shape=jax.ShapeDtypeStruct((Nj, Ni, C), jnp.float32),
        grid=(Nj // tj,),
        in_specs=[
            pl.BlockSpec((tj, Ni, HD4), lambda jb: (jb, 0, 0)),   # q|k|v|g columns
            pl.BlockSpec((H, Ni, Ni), lambda jb: (0, 0, 0)),      # bias: resident
            pl.BlockSpec((HD, C), lambda jb: (0, 0)),             # Wo:   resident
        ],
        out_specs=pl.BlockSpec((tj, Ni, C), lambda jb: (jb, 0, 0)),
        scratch_shapes=[pltpu.VMEM((tj, Ni, HD), jnp.bfloat16)],
        compiler_params=pltpu.CompilerParams(
            dimension_semantics=("parallel",),   # j axis shards across v7x's 2 TCs
            vmem_limit_bytes=32 * 1024 * 1024),
    )(qkvg3, bias_hm, wo)


# --------------------------------- Wrapper -----------------------------------
def triangle_attention_ending_node(pair_rep, params):
    N, N2, C = pair_rep.shape
    assert N == N2
    H, D = params["num_heads"], params["num_channels"]
    HD = H * D

    # j-major view: puts the attention "column" index on the leading block axis
    # so Kernel B only ever indexes leading dims and lanes (robust lowering).
    x_jm = jnp.transpose(pair_rep, (1, 0, 2)).reshape(N * N, C)

    # Fused projection weight [Wq | Wk | Wv | Wg | Wb] -> (C, 4*H*D + H), bf16.
    w_all = jnp.concatenate(
        [params["wq"], params["wk"], params["wv"], params["wg"], params["wb"]],
        axis=1).astype(jnp.bfloat16)

    qkvg, b = projections_pallas(x_jm, params["ln_gamma"], params["ln_beta"],
                                 w_all, n_qkvg=4 * HD)

    qkvg3 = qkvg.reshape(N, N, 4 * HD)            # (Nj, Ni, 4*H*D), free view
    # bias_hm[h, iq, ik] = b_orig[ik, iq, h]  (ending-node bias convention);
    # with the j-major rows of `b` this is just moving the head axis to front.
    bias_hm = jnp.transpose(b.reshape(N, N, H), (2, 0, 1))
    wo_bf = params["wo"].astype(jnp.bfloat16)     # (H*D, C)

    out_jm = attention_pallas(qkvg3, bias_hm, wo_bf,
                              num_heads=H, head_dim=D)   # (Nj, Ni, C)
    return jnp.transpose(out_jm, (1, 0, 2))              # back to (Ni, Nj, C)


# ------------------------------ Pure-JAX reference ---------------------------
def reference(pair_rep, params):
    N, _, C = pair_rep.shape
    H, D = params["num_heads"], params["num_channels"]
    x = pair_rep
    mu = jnp.mean(x, -1, keepdims=True)
    var = jnp.mean((x - mu) ** 2, -1, keepdims=True)
    ln = (x - mu) / jnp.sqrt(var + 1e-5) * params["ln_gamma"] + params["ln_beta"]

    q = (ln @ params["wq"]).reshape(N, N, H, D)
    k = (ln @ params["wk"]).reshape(N, N, H, D)
    v = (ln @ params["wv"]).reshape(N, N, H, D)
    g = (ln @ params["wg"]).reshape(N, N, H, D)
    b = ln @ params["wb"]                                   # (N, N, H)

    scale = 1.0 / math.sqrt(D)
    scores = jnp.einsum("ijhd,kjhd->jhik", q, k) * scale
    scores = scores + jnp.transpose(b, (2, 1, 0))[None]     # bias[h,iq,ik]=b[ik,iq,h]
    p = jax.nn.softmax(scores, axis=-1)
    attn = jnp.einsum("jhik,kjhd->ijhd", p, v)
    out = (g * attn).reshape(N, N, H * D) @ params["wo"]
    return out


# ----------------------------------- Main ------------------------------------
if __name__ == "__main__":
    N, C, H, D = 16, 32, 4, 8   # NxN pair rep, pair_embedding=32, 4 heads x 8 ch

    key = jax.random.PRNGKey(0)
    keys = jax.random.split(key, 9)
    params = dict(
        num_heads=H,
        num_channels=D,
        ln_gamma=1.0 + 0.1 * jax.random.normal(keys[0], (C,), jnp.float32),
        ln_beta=0.1 * jax.random.normal(keys[1], (C,), jnp.float32),
        wq=jax.random.normal(keys[2], (C, H * D), jnp.float32) / math.sqrt(C),
        wk=jax.random.normal(keys[3], (C, H * D), jnp.float32) / math.sqrt(C),
        wv=jax.random.normal(keys[4], (C, H * D), jnp.float32) / math.sqrt(C),
        wg=jax.random.normal(keys[5], (C, H * D), jnp.float32) / math.sqrt(C),
        wb=jax.random.normal(keys[6], (C, H), jnp.float32) / math.sqrt(C),
        wo=jax.random.normal(keys[7], (H * D, C), jnp.float32) / math.sqrt(H * D),
    )
    pair_rep = jax.random.normal(keys[8], (N, N, C), jnp.float32)

    out = triangle_attention_ending_node(pair_rep, params)
    out = jax.block_until_ready(out)

    ref = reference(pair_rep, params)
    assert out.shape == (N, N, C)
    max_ref = float(jnp.max(jnp.abs(ref)))
    err = float(jnp.max(jnp.abs(out - ref)))
    # bf16 MXU operands with f32 accumulation -> relative tolerance vs f32 ref.
    tol = 3e-2 * max(1.0, max_ref)
    if err > tol:
        raise AssertionError(f"kernel/reference mismatch: max abs err = {err} (tol {tol})")
    print("KERNEL_OK")
</pallas_src>

<mosaic_0001>
module attributes {stable_mosaic.version = 11 : i64} {
  func.func @_proj_kernel(%arg0: i32, %arg1: memref<256x32xf32, #tpu.memory_space<vmem>>, %arg2: memref<1x32xf32, #tpu.memory_space<vmem>>, %arg3: memref<1x32xf32, #tpu.memory_space<vmem>>, %arg4: memref<32x132xbf16, #tpu.memory_space<vmem>>, %arg5: memref<256x128xbf16, #tpu.memory_space<vmem>>, %arg6: memref<256x4xf32, #tpu.memory_space<vmem>>) attributes {dimension_semantics = [#tpu.dimension_semantics<parallel>], iteration_bounds = array<i64: 1>, scalar_prefetch = 0 : i64, scratch_operands = 0 : i64, tpu.core_type = #tpu.core_type<tc>, window_params = [{transform_indices = @transform_0, window_bounds = array<i64: 256, 32>}, {pipeline_mode = #tpu.pipeline_mode<synchronous>, transform_indices = @transform_1, window_bounds = array<i64: 1, 32>}, {pipeline_mode = #tpu.pipeline_mode<synchronous>, transform_indices = @transform_2, window_bounds = array<i64: 1, 32>}, {pipeline_mode = #tpu.pipeline_mode<synchronous>, transform_indices = @transform_3, window_bounds = array<i64: 32, 132>}, {transform_indices = @transform_4, window_bounds = array<i64: 256, 128>}, {transform_indices = @transform_5, window_bounds = array<i64: 256, 4>}]} {
    %c0 = arith.constant 0 : index
    %c0_0 = arith.constant 0 : index
    %0 = vector.load %arg1[%c0, %c0_0] : memref<256x32xf32, #tpu.memory_space<vmem>>, vector<256x32xf32>
    %cst = arith.constant dense<0.000000e+00> : vector<256xf32>
    %1 = vector.multi_reduction <add>, %0, %cst [1] : vector<256x32xf32> to vector<256xf32>
    %2 = vector.shape_cast %1 : vector<256xf32> to vector<256x1xf32>
    %cst_1 = arith.constant 3.200000e+01 : f32
    %3 = vector.broadcast %cst_1 : f32 to vector<256x1xf32>
    %4 = arith.divf %2, %3 : vector<256x1xf32>
    %5 = vector.broadcast %4 : vector<256x1xf32> to vector<256x32xf32>
    %6 = arith.subf %0, %5 : vector<256x32xf32>
    %7 = arith.mulf %6, %6 : vector<256x32xf32>
    %cst_2 = arith.constant dense<0.000000e+00> : vector<256xf32>
    %8 = vector.multi_reduction <add>, %7, %cst_2 [1] : vector<256x32xf32> to vector<256xf32>
    %9 = vector.shape_cast %8 : vector<256xf32> to vector<256x1xf32>
    %cst_3 = arith.constant 3.200000e+01 : f32
    %10 = vector.broadcast %cst_3 : f32 to vector<256x1xf32>
    %11 = arith.divf %9, %10 : vector<256x1xf32>
    %cst_4 = arith.constant 9.99999974E-6 : f32
    %12 = vector.broadcast %cst_4 : f32 to vector<256x1xf32>
    %13 = arith.addf %11, %12 : vector<256x1xf32>
    %14 = math.rsqrt %13 : vector<256x1xf32>
    %15 = vector.broadcast %14 : vector<256x1xf32> to vector<256x32xf32>
    %16 = arith.mulf %6, %15 : vector<256x32xf32>
    %c0_5 = arith.constant 0 : index
    %c0_6 = arith.constant 0 : index
    %17 = vector.load %arg2[%c0_5, %c0_6] : memref<1x32xf32, #tpu.memory_space<vmem>>, vector<1x32xf32>
    %18 = vector.broadcast %17 : vector<1x32xf32> to vector<256x32xf32>
    %19 = arith.mulf %16, %18 : vector<256x32xf32>
    %c0_7 = arith.constant 0 : index
    %c0_8 = arith.constant 0 : index
    %20 = vector.load %arg3[%c0_7, %c0_8] : memref<1x32xf32, #tpu.memory_space<vmem>>, vector<1x32xf32>
    %21 = vector.broadcast %20 : vector<1x32xf32> to vector<256x32xf32>
    %22 = arith.addf %19, %21 : vector<256x32xf32>
    %23 = arith.truncf %22 : vector<256x32xf32> to vector<256x32xbf16>
    %c0_9 = arith.constant 0 : index
    %c0_10 = arith.constant 0 : index
    %24 = vector.load %arg4[%c0_9, %c0_10] : memref<32x132xbf16, #tpu.memory_space<vmem>>, vector<32x132xbf16>
    %cst_11 = arith.constant dense<0.000000e+00> : vector<256x132xf32>
    %25 = tpu.matmul %23, %24, %cst_11 {dimension_numbers = #tpu.dot_dimension_numbers<[1], [0], [0], [1], [0, 0, 1, 1], [], []>} : vector<256x32xbf16>, vector<32x132xbf16>, vector<256x132xf32> -> vector<256x132xf32>
    %26 = vector.extract_strided_slice %25 {offsets = [0, 0], sizes = [256, 128], strides = [1, 1]} : vector<256x132xf32> to vector<256x128xf32>
    %27 = arith.truncf %26 : vector<256x128xf32> to vector<256x128xbf16>
    %c0_12 = arith.constant 0 : index
    %c0_13 = arith.constant 0 : index
    %28 = vector.load %arg5[%c0_12, %c0_13] : memref<256x128xbf16, #tpu.memory_space<vmem>>, vector<256x128xbf16>
    tpu.vector_store %arg5[%c0_12, %c0_13], %27 {strides = array<i32>} : memref<256x128xbf16, #tpu.memory_space<vmem>>, vector<256x128xbf16>,
    %29 = vector.extract_strided_slice %25 {offsets = [0, 128], sizes = [256, 4], strides = [1, 1]} : vector<256x132xf32> to vector<256x4xf32>
    %c0_14 = arith.constant 0 : index
    %c0_15 = arith.constant 0 : index
    %30 = vector.load %arg6[%c0_14, %c0_15] : memref<256x4xf32, #tpu.memory_space<vmem>>, vector<256x4xf32>
    tpu.vector_store %arg6[%c0_14, %c0_15], %29 {strides = array<i32>} : memref<256x4xf32, #tpu.memory_space<vmem>>, vector<256x4xf32>,
    return
  }
  func.func @transform_0(%arg0: i32) -> (i32, i32) {
    %c0_i32 = arith.constant 0 : i32
    %c0_i32_0 = arith.constant 0 : i32
    return %arg0, %c0_i32 : i32, i32
  }
  func.func @transform_1(%arg0: i32) -> (i32, i32) {
    %c0_i32 = arith.constant 0 : i32
    %c0_i32_0 = arith.constant 0 : i32
    %c0_i32_1 = arith.constant 0 : i32
    return %c0_i32, %c0_i32_0 : i32, i32
  }
  func.func @transform_2(%arg0: i32) -> (i32, i32) {
    %c0_i32 = arith.constant 0 : i32
    %c0_i32_0 = arith.constant 0 : i32
    %c0_i32_1 = arith.constant 0 : i32
    return %c0_i32, %c0_i32_0 : i32, i32
  }
  func.func @transform_3(%arg0: i32) -> (i32, i32) {
    %c0_i32 = arith.constant 0 : i32
    %c0_i32_0 = arith.constant 0 : i32
    %c0_i32_1 = arith.constant 0 : i32
    return %c0_i32, %c0_i32_0 : i32, i32
  }
  func.func @transform_4(%arg0: i32) -> (i32, i32) {
    %c0_i32 = arith.constant 0 : i32
    %c0_i32_0 = arith.constant 0 : i32
    return %arg0, %c0_i32 : i32, i32
  }
  func.func @transform_5(%arg0: i32) -> (i32, i32) {
    %c0_i32 = arith.constant 0 : i32
    %c0_i32_0 = arith.constant 0 : i32
    return %arg0, %c0_i32 : i32, i32
  }
}

</mosaic_0001>

<bundles_post_ra>
// kernel: tpu_custom_call.1
= control target key start
LH: loop header
LB: loop body
LE: loop exit
PB: predicated region body
PF: predicated region fallthrough
CT: control target
= control target key end

     0   :  { %vm53_vm0 = vcmask 261120   ;;  %s2055_s0 = inlined_call_operand.vmem [shape: f32[256,32], index: 0, kind: input, shape index: {}]   ;;  %s2056_s1 = inlined_call_operand.vmem [shape: f32[1,32], index: 1, kind: input, shape index: {}]   ;;  %s2057_s2 = inlined_call_operand.vmem [shape: f32[1,32], index: 2, kind: input, shape index: {}]   ;;  %s2058_s3 = inlined_call_operand.vmem [shape: bf16[32,132], index: 3, kind: input, shape index: {}]   ;;  %s2059_s4 = inlined_call_operand.hbm [shape: bf16[256,128], index: 4, kind: output, shape index: {0}]   ;;  %s2060_s5 = inlined_call_operand.vmem [shape: f32[256,4], index: 5, kind: output, shape index: {1}]  }
   0x1   :  { %v1361_v0 = vld [vmem:[%s2055_s0] sm:$0xff]  ;;  %v1371_v2 = vld [vmem:[%s2055_s0 + $0x8] sm:$0xff]  ;;  %v1389_v8 = vld [vmem:[%s2055_s0 + $0x10] sm:$0xff] }
   0x2   :  { %v1366_v1 = vld [vmem:[%s2055_s0 + $0x80] sm:$0xff]  ;;  %v54_v3 = vsel %vm53_vm0, %v1361_v0, 0.0  ;;  %v1380_v5 = vld [vmem:[%s2055_s0 + $0x88] sm:$0xff]  ;;  %v57_v6 = vsel %vm53_vm0, %v1371_v2, 0.0  ;;  %v1394_v9 = vld [vmem:[%s2055_s0 + $0x18] sm:$0xff]  ;;  %v60_v10 = vsel %vm53_vm0, %v1389_v8, 0.0 }
   0x3   :  { %v102_v4 = vsel %vm53_vm0, %v1366_v1, 0.0  ;;  %55 = vadd.xlane.f32.xlu0 %v54_v3  ;;  %v105_v7 = vsel %vm53_vm0, %v1380_v5, 0.0  ;;  %v63_v11 = vsel %vm53_vm0, %v1394_v9, 0.0  ;;  %v1403_v12 = vld [vmem:[%s2055_s0 + $0x90] sm:$0xff]  ;;  %v1408_v13 = vld [vmem:[%s2055_s0 + $0x98] sm:$0xff]  ;;  %v1417_v16 = vld [vmem:[%s2055_s0 + $0x20] sm:$0xff] }
   0x4   :  { %103 = vadd.xlane.f32.xlu1 %v102_v4  ;;  %v108_v14 = vsel %vm53_vm0, %v1403_v12, 0.0  ;;  %v111_v15 = vsel %vm53_vm0, %v1408_v13, 0.0  ;;  %v1422_v17 = vld [vmem:[%s2055_s0 + $0x28] sm:$0xff] }
   0x7   :  { %58 = vadd.xlane.f32.xlu0 %v57_v6 }
   0x8   :  { %106 = vadd.xlane.f32.xlu1 %v105_v7 }
   0xb   :  { %61 = vadd.xlane.f32.xlu0 %v60_v10 }
   0xc   :  { %64 = vadd.xlane.f32.xlu1 %v63_v11 }
   0xd   :  { %11 = vsyncpa [#allocation3], 0  ;;  %v66_v18 = vsel %vm53_vm0, %v1417_v16, 0.0  ;;  %v69_v19 = vsel %vm53_vm0, %v1422_v17, 0.0  ;;  %v1431_v20 = vld [vmem:[%s2055_s0 + $0xa0] sm:$0xff]  ;;  %v1436_v21 = vld [vmem:[%s2055_s0 + $0xa8] sm:$0xff] }
   0xe   :  { %v114_v22 = vsel %vm53_vm0, %v1431_v20, 0.0  ;;  %v117_v23 = vsel %vm53_vm0, %v1436_v21, 0.0  ;;  %v1445_v24 = vld [vmem:[%s2055_s0 + $0x30] sm:$0xff]  ;;  %v1450_v25 = vld [vmem:[%s2055_s0 + $0x38] sm:$0xff]  ;;  %v1473_v32 = vld [vmem:[%s2055_s0 + $0x40] sm:$0xff]  ;;  %vm990_vm1 = vcmask 31744  }
   0xf   :  { %109 = vadd.xlane.f32.xlu0 %v108_v14  ;;  %v72_v26 = vsel %vm53_vm0, %v1445_v24, 0.0  ;;  %v75_v27 = vsel %vm53_vm0, %v1450_v25, 0.0  ;;  %v1459_v28 = vld [vmem:[%s2055_s0 + $0xb0] sm:$0xff]  ;;  %v1464_v29 = vld [vmem:[%s2055_s0 + $0xb8] sm:$0xff]  ;;  %v1478_v33 = vld [vmem:[%s2055_s0 + $0x48] sm:$0xff]  ;;  %v78_v34 = vsel %vm53_vm0, %v1473_v32, 0.0 }
  0x10   :  { %112 = vadd.xlane.f32.xlu1 %v111_v15  ;;  %v120_v30 = vsel %vm53_vm0, %v1459_v28, 0.0  ;;  %v123_v31 = vsel %vm53_vm0, %v1464_v29, 0.0  ;;  %v81_v35 = vsel %vm53_vm0, %v1478_v33, 0.0  ;;  %v1487_v36 = vld [vmem:[%s2055_s0 + $0xc0] sm:$0xff]  ;;  %v1492_v37 = vld [vmem:[%s2055_s0 + $0xc8] sm:$0xff]  ;;  %v1501_v40 = vld [vmem:[%s2055_s0 + $0x50] sm:$0xff] }
  0x11   :  { %v126_v38 = vsel %vm53_vm0, %v1487_v36, 0.0  ;;  %v129_v39 = vsel %vm53_vm0, %v1492_v37, 0.0  ;;  %v1506_v41 = vld [vmem:[%s2055_s0 + $0x58] sm:$0xff]  ;;  %v84_v42 = vsel %vm53_vm0, %v1501_v40, 0.0  ;;  %v1515_v44 = vld [vmem:[%s2055_s0 + $0xd0] sm:$0xff]  ;;  %v1529_v48 = vld [vmem:[%s2055_s0 + $0x60] sm:$0xff] }
  0x12   :  { %v87_v43 = vsel %vm53_vm0, %v1506_v41, 0.0  ;;  %v1520_v45 = vld [vmem:[%s2055_s0 + $0xd8] sm:$0xff]  ;;  %v132_v46 = vsel %vm53_vm0, %v1515_v44, 0.0  ;;  %v1534_v49 = vld [vmem:[%s2055_s0 + $0x68] sm:$0xff]  ;;  %v90_v50 = vsel %vm53_vm0, %v1529_v48, 0.0  ;;  %v1543_v52 = vld [vmem:[%s2055_s0 + $0xe0] sm:$0xff] }
  0x13   :  { %67 = vadd.xlane.f32.xlu0 %v66_v18  ;;  %v135_v47 = vsel %vm53_vm0, %v1520_v45, 0.0  ;;  %v93_v51 = vsel %vm53_vm0, %v1534_v49, 0.0  ;;  %v1548_v53 = vld [vmem:[%s2055_s0 + $0xe8] sm:$0xff]  ;;  %v138_v54 = vsel %vm53_vm0, %v1543_v52, 0.0  ;;  %v1557_v56 = vld [vmem:[%s2055_s0 + $0x70] sm:$0xff]  ;;  %v1562_v57 = vld [vmem:[%s2055_s0 + $0x78] sm:$0xff] }
  0x14   :  { %70 = vadd.xlane.f32.xlu1 %v69_v19  ;;  %v141_v55 = vsel %vm53_vm0, %v1548_v53, 0.0  ;;  %v96_v58 = vsel %vm53_vm0, %v1557_v56, 0.0  ;;  %v99_v59 = vsel %vm53_vm0, %v1562_v57, 0.0  ;;  %v1571_v60 = vld [vmem:[%s2055_s0 + $0xf0] sm:$0xff]  ;;  %v1576_v61 = vld [vmem:[%s2055_s0 + $0xf8] sm:$0xff] }
  0x15   :  { %v144_v62 = vsel %vm53_vm0, %v1571_v60, 0.0  ;;  %v147_v63 = vsel %vm53_vm0, %v1576_v61, 0.0 }
  0x17   :  { %115 = vadd.xlane.f32.xlu0 %v114_v22 }
  0x18   :  { %118 = vadd.xlane.f32.xlu1 %v117_v23 }
  0x1b   :  { %73 = vadd.xlane.f32.xlu0 %v72_v26 }
  0x1c   :  { %76 = vadd.xlane.f32.xlu1 %v75_v27 }
  0x1f   :  { %121 = vadd.xlane.f32.xlu0 %v120_v30 }
  0x20   :  { %124 = vadd.xlane.f32.xlu1 %v123_v31 }
  0x23   :  { %79 = vadd.xlane.f32.xlu0 %v78_v34 }
  0x24   :  { %82 = vadd.xlane.f32.xlu1 %v81_v35 }
  0x27   :  { %127 = vadd.xlane.f32.xlu0 %v126_v38 }
  0x28   :  { %130 = vadd.xlane.f32.xlu1 %v129_v39 }
  0x2b   :  { %85 = vadd.xlane.f32.xlu0 %v84_v42 }
  0x2c   :  { %88 = vadd.xlane.f32.xlu1 %v87_v43 }
  0x2f   :  { %133 = vadd.xlane.f32.xlu0 %v132_v46 }
  0x30   :  { %136 = vadd.xlane.f32.xlu1 %v135_v47 }
  0x33   :  { %91 = vadd.xlane.f32.xlu0 %v90_v50 }
  0x34   :  { %94 = vadd.xlane.f32.xlu1 %v93_v51 }
  0x37   :  { %139 = vadd.xlane.f32.xlu0 %v138_v54 }
  0x38   :  { %142 = vadd.xlane.f32.xlu1 %v141_v55 }
  0x3b   :  { %97 = vadd.xlane.f32.xlu0 %v96_v58 }
  0x3c   :  { %100 = vadd.xlane.f32.xlu1 %v99_v59 }
  0x3f   :  { %145 = vadd.xlane.f32.xlu0 %v144_v62 }
  0x40   :  { %148 = vadd.xlane.f32.xlu1 %v147_v63 }
  0x8c   :  { %v56_v3 = vpop.xlane.xlu0 %55 }
  0x8d   :  { %v104_v4 = vpop.xlane.xlu1 %103  ;;  %v151_v6 = vmul.f32 0.03125, %v56_v3 }
  0x8e   :  { %v167_v7 = vmul.f32 0.03125, %v104_v4 }
  0x8f   :  { %v1583_v10 = vsub.f32 %v1361_v0, %v151_v6 }
  0x90   :  { %v1586_v11 = vsub.f32 %v1366_v1, %v167_v7  ;;  %v59_v14 = vpop.xlane.xlu0 %58 }
  0x91   :  { %v107_v15 = vpop.xlane.xlu1 %106  ;;  %v152_v18 = vmul.f32 0.03125, %v59_v14  ;;  %v215_v22 = vmul.f32 %v1583_v10, %v1583_v10 }
  0x92   :  { %v168_v19 = vmul.f32 0.03125, %v107_v15  ;;  %v231_v23 = vmul.f32 %v1586_v11, %v1586_v11 }
  0x93   :  { %v1593_v26 = vsub.f32 %v1371_v2, %v152_v18  ;;  %v247_v0 = vsel %vm53_vm0, %v215_v22, 0.0 }
  0x94   :  { %v1596_v27 = vsub.f32 %v1380_v5, %v168_v19  ;;  %248 = vadd.xlane.f32.xlu0 %v247_v0  ;;  %v62_v1 = vpop.xlane.xlu0 %61  ;;  %v295_v31 = vsel %vm53_vm0, %v231_v23, 0.0 }
  0x95   :  { %v65_v30 = vpop.xlane.xlu1 %64  ;;  %v153_v34 = vmul.f32 0.03125, %v62_v1  ;;  %v216_v38 = vmul.f32 %v1593_v26, %v1593_v26 }
  0x96   :  { %v154_v35 = vmul.f32 0.03125, %v65_v30  ;;  %v232_v39 = vmul.f32 %v1596_v27, %v1596_v27 }
  0x97   :  { %v1605_v2 = vsub.f32 %v1389_v8, %v153_v34  ;;  %v250_v42 = vsel %vm53_vm0, %v216_v38, 0.0 }
  0x98   :  { %v1608_v5 = vsub.f32 %v1394_v9, %v154_v35  ;;  %296 = vadd.xlane.f32.xlu0 %v295_v31  ;;  %251 = vadd.xlane.f32.xlu1 %v250_v42  ;;  %v110_v43 = vpop.xlane.xlu0 %109  ;;  %v298_v47 = vsel %vm53_vm0, %v232_v39, 0.0 }
  0x99   :  { %v113_v46 = vpop.xlane.xlu1 %112  ;;  %v169_v50 = vmul.f32 0.03125, %v110_v43  ;;  %v217_v54 = vmul.f32 %v1605_v2, %v1605_v2 }
  0x9a   :  { %v170_v51 = vmul.f32 0.03125, %v113_v46  ;;  %v218_v8 = vmul.f32 %v1608_v5, %v1608_v5 }
  0x9b   :  { %v1617_v55 = vsub.f32 %v1403_v12, %v169_v50  ;;  %v253_v58 = vsel %vm53_vm0, %v217_v54, 0.0 }
  0x9c   :  { %v1620_v9 = vsub.f32 %v1408_v13, %v170_v51  ;;  %299 = vadd.xlane.f32.xlu1 %v298_v47  ;;  %254 = vadd.xlane.f32.xlu0 %v253_v58  ;;  %v68_v59 = vpop.xlane.xlu0 %67  ;;  %v256_v63 = vsel %vm53_vm0, %v218_v8, 0.0 }
  0x9d   :  { %v71_v62 = vpop.xlane.xlu1 %70  ;;  %v155_v3 = vmul.f32 0.03125, %v68_v59  ;;  %v233_v6 = vmul.f32 %v1617_v55, %v1617_v55 }
  0x9e   :  { %v156_v4 = vmul.f32 0.03125, %v71_v62  ;;  %v234_v12 = vmul.f32 %v1620_v9, %v1620_v9 }
  0x9f   :  { %v1629_v7 = vsub.f32 %v1417_v16, %v155_v3  ;;  %v301_v14 = vsel %vm53_vm0, %v233_v6, 0.0 }
  0xa0   :  { %v1632_v13 = vsub.f32 %v1422_v17, %v156_v4  ;;  %257 = vadd.xlane.f32.xlu1 %v256_v63  ;;  %302 = vadd.xlane.f32.xlu0 %v301_v14  ;;  %v116_v15 = vpop.xlane.xlu0 %115  ;;  %v304_v19 = vsel %vm53_vm0, %v234_v12, 0.0 }
  0xa1   :  { %v119_v18 = vpop.xlane.xlu1 %118  ;;  %v171_v22 = vmul.f32 0.03125, %v116_v15  ;;  %v219_v0 = vmul.f32 %v1629_v7, %v1629_v7 }
  0xa2   :  { %v172_v23 = vmul.f32 0.03125, %v119_v18  ;;  %v220_v16 = vmul.f32 %v1632_v13, %v1632_v13 }
  0xa3   :  { %v1641_v1 = vsub.f32 %v1431_v20, %v171_v22  ;;  %v259_v30 = vsel %vm53_vm0, %v219_v0, 0.0 }
  0xa4   :  { %v1644_v17 = vsub.f32 %v1436_v21, %v172_v23  ;;  %305 = vadd.xlane.f32.xlu1 %v304_v19  ;;  %260 = vadd.xlane.f32.xlu0 %v259_v30  ;;  %v74_v31 = vpop.xlane.xlu0 %73  ;;  %v262_v35 = vsel %vm53_vm0, %v220_v16, 0.0 }
  0xa5   :  { %v77_v34 = vpop.xlane.xlu1 %76  ;;  %v157_v38 = vmul.f32 0.03125, %v74_v31  ;;  %v235_v42 = vmul.f32 %v1641_v1, %v1641_v1 }
  0xa6   :  { %v158_v39 = vmul.f32 0.03125, %v77_v34  ;;  %v236_v20 = vmul.f32 %v1644_v17, %v1644_v17 }
  0xa7   :  { %v1653_v43 = vsub.f32 %v1445_v24, %v157_v38  ;;  %v307_v46 = vsel %vm53_vm0, %v235_v42, 0.0 }
  0xa8   :  { %v1656_v21 = vsub.f32 %v1450_v25, %v158_v39  ;;  %263 = vadd.xlane.f32.xlu1 %v262_v35  ;;  %308 = vadd.xlane.f32.xlu0 %v307_v46  ;;  %v122_v47 = vpop.xlane.xlu0 %121  ;;  %v310_v51 = vsel %vm53_vm0, %v236_v20, 0.0  ;;  %v1232_v35 = vld [vmem:[%s2058_s3 + $0x14] ss:$8 sps:$4 sm:$0xff]  }
  0xa9   :  { %v125_v50 = vpop.xlane.xlu1 %124  ;;  %v173_v54 = vmul.f32 0.03125, %v122_v47  ;;  %v221_v58 = vmul.f32 %v1653_v43, %v1653_v43  ;;  %649 = vmatprep.subr.bf16.mxu0 %v1232_v35  ;;  %1224 = vmatprep.subr.bf16.mxu1 %v1232_v35 }
  0xaa   :  { %v174_v8 = vmul.f32 0.03125, %v125_v50  ;;  %v222_v24 = vmul.f32 %v1656_v21, %v1656_v21 }
  0xab   :  { %v1665_v59 = vsub.f32 %v1459_v28, %v173_v54  ;;  %v265_v62 = vsel %vm53_vm0, %v221_v58, 0.0 }
  0xac   :  { %v1668_v25 = vsub.f32 %v1464_v29, %v174_v8  ;;  %311 = vadd.xlane.f32.xlu1 %v310_v51  ;;  %266 = vadd.xlane.f32.xlu0 %v265_v62  ;;  %v80_v63 = vpop.xlane.xlu0 %79  ;;  %v268_v4 = vsel %vm53_vm0, %v222_v24, 0.0  ;;  %v1235_v8 = vld [vmem:[%s2058_s3 + $0x4] ss:$8 sps:$4 sm:$0xff]  }
  0xad   :  { %v83_v3 = vpop.xlane.xlu1 %82  ;;  %v159_v6 = vmul.f32 0.03125, %v80_v63  ;;  %v237_v14 = vmul.f32 %v1665_v59, %v1665_v59 }
  0xae   :  { %v160_v12 = vmul.f32 0.03125, %v83_v3  ;;  %v238_v28 = vmul.f32 %v1668_v25, %v1668_v25 }
  0xaf   :  { %v1677_v15 = vsub.f32 %v1473_v32, %v159_v6  ;;  %v313_v18 = vsel %vm53_vm0, %v237_v14, 0.0 }
  0xb0   :  { %v1680_v29 = vsub.f32 %v1478_v33, %v160_v12  ;;  %269 = vadd.xlane.f32.xlu1 %v268_v4  ;;  %314 = vadd.xlane.f32.xlu0 %v313_v18  ;;  %v128_v19 = vpop.xlane.xlu0 %127  ;;  %v316_v23 = vsel %vm53_vm0, %v238_v28, 0.0 }
  0xb1   :  { %v131_v22 = vpop.xlane.xlu1 %130  ;;  %v175_v0 = vmul.f32 0.03125, %v128_v19  ;;  %v223_v30 = vmul.f32 %v1677_v15, %v1677_v15 }
  0xb2   :  { %v176_v16 = vmul.f32 0.03125, %v131_v22  ;;  %v224_v32 = vmul.f32 %v1680_v29, %v1680_v29 }
  0xb3   :  { %v1689_v31 = vsub.f32 %v1487_v36, %v175_v0  ;;  %v271_v34 = vsel %vm53_vm0, %v223_v30, 0.0  ;;  %v1234_v36 = vld [vmem:[%s2058_s3 + $0x10] ss:$8 sps:$4 sm:$0xff]  }
  0xb4   :  { %v1692_v33 = vsub.f32 %v1492_v37, %v176_v16  ;;  %317 = vadd.xlane.f32.xlu1 %v316_v23  ;;  %272 = vadd.xlane.f32.xlu0 %v271_v34  ;;  %v86_v38 = vpop.xlane.xlu0 %85  ;;  %v274_v42 = vsel %vm53_vm0, %v224_v32, 0.0  ;;  %v1324_v16 = vmov 0  }
  0xb5   :  { %v89_v39 = vpop.xlane.xlu1 %88  ;;  %v161_v20 = vmul.f32 0.03125, %v86_v38  ;;  %v239_v37 = vmul.f32 %v1689_v31, %v1689_v31  ;;  %650 = vmatpush1.bf16.msra.mxu0 %v1234_v36  ;;  %1226 = vmatpush1.bf16.msra.mxu1 %v1234_v36 }
  0xb6   :  { %v162_v46 = vmul.f32 0.03125, %v89_v39  ;;  %v240_v47 = vmul.f32 %v1692_v33, %v1692_v33  ;;  %651 = vmatprep.subr.bf16.mxu0 %v1235_v8  ;;  %1225 = vmatprep.subr.bf16.mxu1 %v1235_v8 }
  0xb7   :  { %v1707_v50 = vsub.f32 %v1501_v40, %v161_v20  ;;  %v319_v54 = vsel %vm53_vm0, %v239_v37, 0.0  ;;  %v1237_v40 = vld [vmem:[%s2058_s3] ss:$8 sps:$4 sm:$0xff]   ;;  %669 = vmatprep.mubr.bf16.mxu0 %v1324_v16  ;;  %749 = vmatprep.mubr.bf16.mxu1 %v1324_v16 }
  0xb8   :  { %v1710_v51 = vsub.f32 %v1506_v41, %v162_v46  ;;  %275 = vadd.xlane.f32.xlu1 %v274_v42  ;;  %320 = vadd.xlane.f32.xlu0 %v319_v54  ;;  %v134_v58 = vpop.xlane.xlu0 %133  ;;  %v322_v62 = vsel %vm53_vm0, %v240_v47, 0.0 }
  0xb9   :  { %v137_v24 = vpop.xlane.xlu1 %136  ;;  %v177_v63 = vmul.f32 0.03125, %v134_v58  ;;  %v225_v41 = vmul.f32 %v1707_v50, %v1707_v50  ;;  %652 = vmatpush1.bf16.msra.mxu0 %v1237_v40  ;;  %1227 = vmatpush1.bf16.msra.mxu1 %v1237_v40 }
  0xba   :  { %v178_v3 = vmul.f32 0.03125, %v137_v24  ;;  %v226_v4 = vmul.f32 %v1710_v51, %v1710_v51 }
  0xbb   :  { %v1725_v6 = vsub.f32 %v1515_v44, %v177_v63  ;;  %v277_v14 = vsel %vm53_vm0, %v225_v41, 0.0 }
  0xbc   :  { %v1728_v12 = vsub.f32 %v1520_v45, %v178_v3  ;;  %323 = vadd.xlane.f32.xlu1 %v322_v62  ;;  %278 = vadd.xlane.f32.xlu0 %v277_v14  ;;  %v92_v28 = vpop.xlane.xlu0 %91  ;;  %v280_v19 = vsel %vm53_vm0, %v226_v4, 0.0 }
  0xbd   :  { %v95_v18 = vpop.xlane.xlu1 %94  ;;  %v163_v22 = vmul.f32 0.03125, %v92_v28  ;;  %v241_v0 = vmul.f32 %v1725_v6, %v1725_v6 }
  0xbe   :  { %v164_v23 = vmul.f32 0.03125, %v95_v18  ;;  %v242_v44 = vmul.f32 %v1728_v12, %v1728_v12 }
  0xbf   :  { %v1739_v45 = vsub.f32 %v1529_v48, %v163_v22  ;;  %v325_v32 = vsel %vm53_vm0, %v241_v0, 0.0 }
  0xc0   :  { %v1742_v30 = vsub.f32 %v1534_v49, %v164_v23  ;;  %281 = vadd.xlane.f32.xlu1 %v280_v19  ;;  %326 = vadd.xlane.f32.xlu0 %v325_v32  ;;  %v140_v34 = vpop.xlane.xlu0 %139  ;;  %v328_v38 = vsel %vm53_vm0, %v242_v44, 0.0 }
  0xc1   :  { %v143_v35 = vpop.xlane.xlu1 %142  ;;  %v179_v39 = vmul.f32 0.03125, %v140_v34  ;;  %v227_v36 = vmul.f32 %v1739_v45, %v1739_v45 }
  0xc2   :  { %v180_v42 = vmul.f32 0.03125, %v143_v35  ;;  %v228_v48 = vmul.f32 %v1742_v30, %v1742_v30 }
  0xc3   :  { %v1751_v20 = vsub.f32 %v1543_v52, %v179_v39  ;;  %v283_v46 = vsel %vm53_vm0, %v227_v36, 0.0 }
  0xc4   :  { %v1754_v49 = vsub.f32 %v1548_v53, %v180_v42  ;;  %329 = vadd.xlane.f32.xlu1 %v328_v38  ;;  %284 = vadd.xlane.f32.xlu0 %v283_v46  ;;  %v98_v37 = vpop.xlane.xlu0 %97  ;;  %v286_v54 = vsel %vm53_vm0, %v228_v48, 0.0 }
  0xc5   :  { %v101_v47 = vpop.xlane.xlu1 %100  ;;  %v165_v8 = vmul.f32 0.03125, %v98_v37  ;;  %v243_v24 = vmul.f32 %v1751_v20, %v1751_v20 }
  0xc6   :  { %v166_v58 = vmul.f32 0.03125, %v101_v47  ;;  %v244_v52 = vmul.f32 %v1754_v49, %v1754_v49 }
  0xc7   :  { %v1763_v62 = vsub.f32 %v1557_v56, %v165_v8  ;;  %v331_v40 = vsel %vm53_vm0, %v243_v24, 0.0 }
  0xc8   :  { %v1766_v53 = vsub.f32 %v1562_v57, %v166_v58  ;;  %287 = vadd.xlane.f32.xlu1 %v286_v54  ;;  %332 = vadd.xlane.f32.xlu0 %v331_v40  ;;  %v146_v63 = vpop.xlane.xlu0 %145  ;;  %v334_v41 = vsel %vm53_vm0, %v244_v52, 0.0 }
  0xc9   :  { %v149_v3 = vpop.xlane.xlu1 %148  ;;  %v181_v4 = vmul.f32 0.03125, %v146_v63  ;;  %v229_v28 = vmul.f32 %v1763_v62, %v1763_v62 }
  0xca   :  { %v182_v14 = vmul.f32 0.03125, %v149_v3  ;;  %v230_v56 = vmul.f32 %v1766_v53, %v1766_v53 }
  0xcb   :  { %v1775_v18 = vsub.f32 %v1571_v60, %v181_v4  ;;  %v289_v19 = vsel %vm53_vm0, %v229_v28, 0.0 }
  0xcc   :  { %v1778_v57 = vsub.f32 %v1576_v61, %v182_v14  ;;  %335 = vadd.xlane.f32.xlu1 %v334_v41  ;;  %290 = vadd.xlane.f32.xlu0 %v289_v19  ;;  %v292_v22 = vsel %vm53_vm0, %v230_v56, 0.0 }
  0xcd   :  { %v245_v23 = vmul.f32 %v1775_v18, %v1775_v18 }
  0xce   :  { %v246_v0 = vmul.f32 %v1778_v57, %v1778_v57 }
  0xcf   :  { %v337_v44 = vsel %vm53_vm0, %v245_v23, 0.0 }
  0xd0   :  { %293 = vadd.xlane.f32.xlu1 %v292_v22  ;;  %338 = vadd.xlane.f32.xlu0 %v337_v44  ;;  %v340_v60 = vsel %vm53_vm0, %v246_v0, 0.0  ;;  %v1792_v44 = vld [vmem:[%s2056_s1] ss:$0 sm:$0xff]  ;;  %s1325_s1 = smov [#allocation2]  }
  0xd4   :  { %341 = vadd.xlane.f32.xlu1 %v340_v60 }
 0x11d   :  { %v249_v61 = vpop.xlane.xlu0 %248 }
 0x11e   :  { %v343_v32 = vmul.f32 0.03125, %v249_v61 }
 0x120   :  { %v375_v34 = vadd.f32 1e-05, %v343_v32 }
 0x121   :  { %v252_v35 = vpop.xlane.xlu1 %251  ;;  %v297_v38 = vpop.xlane.xlu0 %296 }
 0x122   :  { %1238 = vrsqrt.f32 %v375_v34  ;;  %v344_v39 = vmul.f32 0.03125, %v252_v35  ;;  %v359_v42 = vmul.f32 0.03125, %v297_v38 }
 0x124   :  { %v376_v36 = vadd.f32 1e-05, %v344_v39  ;;  %v391_v48 = vadd.f32 1e-05, %v359_v42 }
 0x125   :  { %v300_v46 = vpop.xlane.xlu1 %299  ;;  %v255_v37 = vpop.xlane.xlu0 %254 }
 0x126   :  { %1240 = vrsqrt.f32 %v376_v36  ;;  %v360_v47 = vmul.f32 0.03125, %v300_v46  ;;  %v345_v54 = vmul.f32 0.03125, %v255_v37 }
 0x127   :  { %1242 = vrsqrt.f32 %v391_v48 }
 0x128   :  { %v392_v8 = vadd.f32 1e-05, %v360_v47  ;;  %v377_v58 = vadd.f32 1e-05, %v345_v54 }
 0x129   :  { %v258_v24 = vpop.xlane.xlu1 %257  ;;  %v303_v52 = vpop.xlane.xlu0 %302 }
 0x12a   :  { %1244 = vrsqrt.f32 %v392_v8  ;;  %v346_v40 = vmul.f32 0.03125, %v258_v24  ;;  %v361_v63 = vmul.f32 0.03125, %v303_v52 }
 0x12b   :  { %1246 = vrsqrt.f32 %v377_v58 }
 0x12c   :  { %v378_v3 = vadd.f32 1e-05, %v346_v40  ;;  %v393_v41 = vadd.f32 1e-05, %v361_v63 }
 0x12d   :  { %v306_v4 = vpop.xlane.xlu1 %305  ;;  %v261_v14 = vpop.xlane.xlu0 %260 }
 0x12e   :  { %1248 = vrsqrt.f32 %v378_v3  ;;  %v362_v28 = vmul.f32 0.03125, %v306_v4  ;;  %v347_v56 = vmul.f32 0.03125, %v261_v14 }
 0x12f   :  { %v1239_v19 = vpop.eup %1238  ;;  %1250 = vrsqrt.f32 %v393_v41 }
 0x130   :  { %v394_v22 = vadd.f32 1e-05, %v362_v28  ;;  %v379_v23 = vadd.f32 1e-05, %v347_v56  ;;  %v439_v0 = vmul.f32 %v1239_v19, %v1583_v10  ;;  %v1799_v10 = vld [vmem:[%s2057_s2] ss:$0 sm:$0xff] }
 0x131   :  { %v264_v60 = vpop.xlane.xlu1 %263  ;;  %v309_v61 = vpop.xlane.xlu0 %308  ;;  %s1028_s2 = sshll.u32 %s1325_s1, 4  ;;  %s1029_s2 = int_to_ptr.vmem [resolvable:$true] %s1028_s2 }
 0x132   :  { %1252 = vrsqrt.f32 %v394_v22  ;;  %v348_v32 = vmul.f32 0.03125, %v264_v60  ;;  %v363_v34 = vmul.f32 0.03125, %v309_v61  ;;  %v478_v38 = vmul.f32 %v1792_v44, %v439_v0  ;;  %s1302_s23 = scalar_lea.vmem %s1029_s2, 2048  ;;  %p1307_p1 = scmp.lt.s32.totalorder %s1029_s2, %s1029_s2 }
 0x133   :  { %v1241_v35 = vpop.eup %1240  ;;  %1254 = vrsqrt.f32 %v379_v23  ;;  %p1303_p0 = scmp.ne.s32.totalorder %s1029_s2, %s1302_s23  ;;  %p1308_p2 = scmp.lt.s32.totalorder %s1302_s23, %s1302_s23 }
 0x134   :  { %v1243_v39 = vpop.eup %1242  ;;  %v380_v42 = vadd.f32 1e-05, %v348_v32  ;;  %v395_v36 = vadd.f32 1e-05, %v363_v34  ;;  %v440_v48 = vmul.f32 %v1241_v35, %v1593_v26  ;;  %v517_v52 = vadd.f32 %v1799_v10, %v478_v38 }
 0x135   :  { %v312_v46 = vpop.xlane.xlu1 %311  ;;  %v267_v37 = vpop.xlane.xlu0 %266  ;;  %v455_v47 = vmul.f32 %v1243_v39, %v1586_v11  ;;  %p1309_p3 = por %p1308_p2, %p1307_p1 }
 0x136   :  { %1256 = vrsqrt.f32 %v380_v42  ;;  %v364_v54 = vmul.f32 0.03125, %v312_v46  ;;  %v349_v8 = vmul.f32 0.03125, %v267_v37  ;;  %v479_v58 = vmul.f32 %v1792_v44, %v440_v48 }
 0x137   :  { %v1245_v24 = vpop.eup %1244  ;;  %1258 = vrsqrt.f32 %v395_v36  ;;  %v494_v11 = vmul.f32 %v1792_v44, %v455_v47  ;;  %p1310_p4 = pnand %p1309_p3, %p1303_p0 }
 0x138   :  { %v1247_v40 = vpop.eup %1246  ;;  %v396_v26 = vadd.f32 1e-05, %v364_v54  ;;  %v381_v63 = vadd.f32 1e-05, %v349_v8  ;;  %v518_v3 = vadd.f32 %v1799_v10, %v479_v58  ;;  %v456_v41 = vmul.f32 %v1245_v24, %v1596_v27 }
 0x139   :  { %v270_v4 = vpop.xlane.xlu1 %269  ;;  %v315_v14 = vpop.xlane.xlu0 %314  ;;  %v441_v28 = vmul.f32 %v1247_v40, %v1605_v2  ;;  %v533_v2 = vadd.f32 %v1799_v10, %v494_v11 }
 0x13a   :  { %1260 = vrsqrt.f32 %v396_v26  ;;  %v350_v56 = vmul.f32 0.03125, %v270_v4  ;;  %v365_v19 = vmul.f32 0.03125, %v315_v14  ;;  %v549_v22 = vpack.c.bf16 %v518_v3, %v517_v52 }
 0x13b   :  { %v1249_v23 = vpop.eup %1248  ;;  %1262 = vrsqrt.f32 %v381_v63  ;;  %v495_v0 = vmul.f32 %v1792_v44, %v456_v41  ;;  %v480_v60 = vmul.f32 %v1792_v44, %v441_v28 }
 0x13c   :  { %v1251_v61 = vpop.eup %1250  ;;  %v382_v32 = vadd.f32 1e-05, %v350_v56  ;;  %v397_v34 = vadd.f32 1e-05, %v365_v19  ;;  %1049 = vmatmul.mubr.msk.bf16.vlgmr.msra.gmra.mxu0 %vm53_vm0, %v549_v22  ;;  %v442_v27 = vmul.f32 %v1249_v23, %v1608_v5 }
 0x13d   :  { %v318_v35 = vpop.xlane.xlu1 %317  ;;  %v273_v38 = vpop.xlane.xlu0 %272  ;;  %v534_v39 = vadd.f32 %v1799_v10, %v495_v0  ;;  %679 = vmatprep.mubr.bf16.mxu0 %v1324_v16  ;;  %v457_v42 = vmul.f32 %v1251_v61, %v1617_v55  ;;  %v519_v5 = vadd.f32 %v1799_v10, %v480_v60 }
 0x13e   :  { %1264 = vrsqrt.f32 %v382_v32  ;;  %v366_v36 = vmul.f32 0.03125, %v318_v35  ;;  %v351_v48 = vmul.f32 0.03125, %v273_v38  ;;  %v481_v46 = vmul.f32 %v1792_v44, %v442_v27 }
 0x13f   :  { %v1253_v37 = vpop.eup %1252  ;;  %1266 = vrsqrt.f32 %v397_v34  ;;  %v557_v47 = vpack.c.bf16 %v534_v39, %v533_v2  ;;  %v496_v26 = vmul.f32 %v1792_v44, %v457_v42 }
 0x140   :  { %v1255_v54 = vpop.eup %1254  ;;  %v398_v8 = vadd.f32 1e-05, %v366_v36  ;;  %v383_v58 = vadd.f32 1e-05, %v351_v48  ;;  %v520_v24 = vadd.f32 %v1799_v10, %v481_v46  ;;  %v458_v52 = vmul.f32 %v1253_v37, %v1620_v9 }
 0x141   :  { %1057 = vmatmul.mubr.msk.bf16.vlgmr.msra.gmra.mxu1 %vm53_vm0, %v557_v47  ;;  %v276_v55 = vpop.xlane.xlu1 %275  ;;  %v321_v40 = vpop.xlane.xlu0 %320  ;;  %v443_v63 = vmul.f32 %v1255_v54, %v1629_v7  ;;  %v535_v0 = vadd.f32 %v1799_v10, %v496_v26 }
 0x142   :  { %1268 = vrsqrt.f32 %v398_v8  ;;  %v352_v3 = vmul.f32 0.03125, %v276_v55  ;;  %v367_v41 = vmul.f32 0.03125, %v321_v40  ;;  %v550_v4 = vpack.c.bf16 %v520_v24, %v519_v5  ;;  %759 = vmatprep.mubr.bf16.mxu1 %v1324_v16 }
 0x143   :  { %v1257_v14 = vpop.eup %1256  ;;  %1270 = vrsqrt.f32 %v383_v58  ;;  %v497_v11 = vmul.f32 %v1792_v44, %v458_v52  ;;  %v482_v9 = vmul.f32 %v1792_v44, %v443_v63 }
 0x144   :  { %v1259_v28 = vpop.eup %1258  ;;  %v384_v56 = vadd.f32 1e-05, %v352_v3  ;;  %v399_v19 = vadd.f32 1e-05, %v367_v41  ;;  %1050 = vmatmul.mubr.msk.bf16.gmra.mxu0 %vm53_vm0, %v550_v4  ;;  %v444_v22 = vmul.f32 %v1257_v14, %v1632_v13 }
 0x145   :  { %v324_v7 = vpop.xlane.xlu1 %323  ;;  %v279_v23 = vpop.xlane.xlu0 %278  ;;  %v536_v60 = vadd.f32 %v1799_v10, %v497_v11  ;;  %689 = vmatprep.mubr.bf16.mxu0 %v1324_v16  ;;  %v459_v61 = vmul.f32 %v1259_v28, %v1641_v1  ;;  %v521_v13 = vadd.f32 %v1799_v10, %v482_v9 }
 0x146   :  { %1272 = vrsqrt.f32 %v384_v56  ;;  %v368_v32 = vmul.f32 0.03125, %v324_v7  ;;  %v353_v34 = vmul.f32 0.03125, %v279_v23  ;;  %v483_v27 = vmul.f32 %v1792_v44, %v444_v22 }
 0x147   :  { %v1261_v35 = vpop.eup %1260  ;;  %1274 = vrsqrt.f32 %v399_v19  ;;  %v558_v38 = vpack.c.bf16 %v536_v60, %v535_v0  ;;  %v498_v37 = vmul.f32 %v1792_v44, %v459_v61 }
 0x148   :  { %v1263_v2 = vpop.eup %1262  ;;  %v400_v39 = vadd.f32 1e-05, %v368_v32  ;;  %v385_v42 = vadd.f32 1e-05, %v353_v34  ;;  %v522_v36 = vadd.f32 %v1799_v10, %v483_v27  ;;  %v460_v48 = vmul.f32 %v1261_v35, %v1644_v17 }
 0x149   :  { %1058 = vmatmul.mubr.msk.bf16.gmra.mxu1 %vm53_vm0, %v558_v38  ;;  %v282_v1 = vpop.xlane.xlu1 %281  ;;  %v327_v46 = vpop.xlane.xlu0 %326  ;;  %v445_v47 = vmul.f32 %v1263_v2, %v1653_v43  ;;  %v537_v3 = vadd.f32 %v1799_v10, %v498_v37 }
 0x14a   :  { %1276 = vrsqrt.f32 %v400_v39  ;;  %v354_v5 = vmul.f32 0.03125, %v282_v1  ;;  %v369_v54 = vmul.f32 0.03125, %v327_v46  ;;  %v551_v8 = vpack.c.bf16 %v522_v36, %v521_v13  ;;  %769 = vmatprep.mubr.bf16.mxu1 %v1324_v16 }
 0x14b   :  { %v1265_v58 = vpop.eup %1264  ;;  %1278 = vrsqrt.f32 %v385_v42  ;;  %v499_v24 = vmul.f32 %v1792_v44, %v460_v48  ;;  %v484_v17 = vmul.f32 %v1792_v44, %v445_v47 }
 0x14c   :  { %v1267_v52 = vpop.eup %1266  ;;  %v386_v55 = vadd.f32 1e-05, %v354_v5  ;;  %v401_v40 = vadd.f32 1e-05, %v369_v54  ;;  %1051 = vmatmul.mubr.msk.bf16.gmra.mxu0 %vm53_vm0, %v551_v8  ;;  %v446_v26 = vmul.f32 %v1265_v58, %v1656_v21 }
 0x14d   :  { %v330_v43 = vpop.xlane.xlu1 %329  ;;  %v285_v63 = vpop.xlane.xlu0 %284  ;;  %v538_v41 = vadd.f32 %v1799_v10, %v499_v24  ;;  %699 = vmatprep.mubr.bf16.mxu0 %v1324_v16  ;;  %v461_v4 = vmul.f32 %v1267_v52, %v1665_v59  ;;  %v523_v21 = vadd.f32 %v1799_v10, %v484_v17 }
 0x14e   :  { %1280 = vrsqrt.f32 %v386_v55  ;;  %v370_v14 = vmul.f32 0.03125, %v330_v43  ;;  %v355_v11 = vmul.f32 0.03125, %v285_v63  ;;  %v485_v9 = vmul.f32 %v1792_v44, %v446_v26 }
 0x14f   :  { %v1269_v28 = vpop.eup %1268  ;;  %1282 = vrsqrt.f32 %v401_v40  ;;  %v559_v56 = vpack.c.bf16 %v538_v41, %v537_v3  ;;  %v500_v61 = vmul.f32 %v1792_v44, %v461_v4 }
 0x150   :  { %v1271_v19 = vpop.eup %1270  ;;  %v402_v22 = vadd.f32 1e-05, %v370_v14  ;;  %v387_v7 = vadd.f32 1e-05, %v355_v11  ;;  %v524_v23 = vadd.f32 %v1799_v10, %v485_v9  ;;  %v462_v0 = vmul.f32 %v1269_v28, %v1668_v25 }
 0x151   :  { %1059 = vmatmul.mubr.msk.bf16.gmra.mxu1 %vm53_vm0, %v559_v56  ;;  %v288_v59 = vpop.xlane.xlu1 %287  ;;  %v333_v60 = vpop.xlane.xlu0 %332  ;;  %v447_v32 = vmul.f32 %v1271_v19, %v1677_v15  ;;  %v539_v1 = vadd.f32 %v1799_v10, %v500_v61 }
 0x152   :  { %1284 = vrsqrt.f32 %v402_v22  ;;  %v356_v34 = vmul.f32 0.03125, %v288_v59  ;;  %v371_v27 = vmul.f32 0.03125, %v333_v60  ;;  %v552_v35 = vpack.c.bf16 %v524_v23, %v523_v21  ;;  %779 = vmatprep.mubr.bf16.mxu1 %v1324_v16 }
 0x153   :  { %v1273_v38 = vpop.eup %1272  ;;  %1286 = vrsqrt.f32 %v387_v7  ;;  %v501_v13 = vmul.f32 %v1792_v44, %v462_v0  ;;  %v486_v25 = vmul.f32 %v1792_v44, %v447_v32 }
 0x154   :  { %v1275_v2 = vpop.eup %1274  ;;  %v388_v39 = vadd.f32 1e-05, %v356_v34  ;;  %v403_v42 = vadd.f32 1e-05, %v371_v27  ;;  %1052 = vmatmul.mubr.msk.bf16.gmra.mxu0 %vm53_vm0, %v552_v35  ;;  %v448_v36 = vmul.f32 %v1273_v38, %v1680_v29 }
 0x155   :  { %v336_v15 = vpop.xlane.xlu1 %335  ;;  %v291_v48 = vpop.xlane.xlu0 %290  ;;  %v540_v46 = vadd.f32 %v1799_v10, %v501_v13  ;;  %709 = vmatprep.mubr.bf16.mxu0 %v1324_v16  ;;  %v463_v37 = vmul.f32 %v1275_v2, %v1689_v31  ;;  %v525_v29 = vadd.f32 %v1799_v10, %v486_v25 }
 0x156   :  { %1288 = vrsqrt.f32 %v388_v39  ;;  %v372_v47 = vmul.f32 0.03125, %v336_v15  ;;  %v357_v5 = vmul.f32 0.03125, %v291_v48  ;;  %v487_v54 = vmul.f32 %v1792_v44, %v448_v36 }
 0x157   :  { %v1277_v8 = vpop.eup %1276  ;;  %1290 = vrsqrt.f32 %v403_v42  ;;  %v560_v58 = vpack.c.bf16 %v540_v46, %v539_v1  ;;  %v502_v43 = vmul.f32 %v1792_v44, %v463_v37 }
 0x158   :  { %v1279_v24 = vpop.eup %1278  ;;  %v404_v17 = vadd.f32 1e-05, %v372_v47  ;;  %v389_v52 = vadd.f32 1e-05, %v357_v5  ;;  %v526_v55 = vadd.f32 %v1799_v10, %v487_v54  ;;  %v464_v40 = vmul.f32 %v1277_v8, %v1692_v33 }
 0x159   :  { %1060 = vmatmul.mubr.msk.bf16.gmra.mxu1 %vm53_vm0, %v560_v58  ;;  %v294_v31 = vpop.xlane.xlu1 %293  ;;  %v339_v26 = vpop.xlane.xlu0 %338  ;;  %v449_v63 = vmul.f32 %v1279_v24, %v1707_v50  ;;  %v541_v19 = vadd.f32 %v1799_v10, %v502_v43 }
 0x15a   :  { %1292 = vrsqrt.f32 %v404_v17  ;;  %v358_v3 = vmul.f32 0.03125, %v294_v31  ;;  %v373_v41 = vmul.f32 0.03125, %v339_v26  ;;  %v553_v4 = vpack.c.bf16 %v526_v55, %v525_v29  ;;  %789 = vmatprep.mubr.bf16.mxu1 %v1324_v16 }
 0x15b   :  { %v1281_v14 = vpop.eup %1280  ;;  %1294 = vrsqrt.f32 %v389_v52  ;;  %v503_v11 = vmul.f32 %v1792_v44, %v464_v40  ;;  %v488_v33 = vmul.f32 %v1792_v44, %v449_v63 }
 0x15c   :  { %v1283_v9 = vpop.eup %1282  ;;  %v390_v28 = vadd.f32 1e-05, %v358_v3  ;;  %v405_v56 = vadd.f32 1e-05, %v373_v41  ;;  %1053 = vmatmul.mubr.msk.bf16.gmra.mxu0 %vm53_vm0, %v553_v4  ;;  %v450_v21 = vmul.f32 %v1281_v14, %v1710_v51 }
 0x15d   :  { %v342_v50 = vpop.xlane.xlu1 %341  ;;  %v542_v22 = vadd.f32 %v1799_v10, %v503_v11  ;;  %719 = vmatprep.mubr.bf16.mxu0 %v1324_v16  ;;  %v465_v7 = vmul.f32 %v1283_v9, %v1725_v6  ;;  %v527_v61 = vadd.f32 %v1799_v10, %v488_v33 }
 0x15e   :  { %1296 = vrsqrt.f32 %v390_v28  ;;  %v374_v23 = vmul.f32 0.03125, %v342_v50  ;;  %v489_v0 = vmul.f32 %v1792_v44, %v450_v21 }
 0x15f   :  { %v1285_v59 = vpop.eup %1284  ;;  %1298 = vrsqrt.f32 %v405_v56  ;;  %v561_v60 = vpack.c.bf16 %v542_v22, %v541_v19  ;;  %v504_v35 = vmul.f32 %v1792_v44, %v465_v7 }
 0x160   :  { %v1287_v32 = vpop.eup %1286  ;;  %v406_v51 = vadd.f32 1e-05, %v374_v23  ;;  %v528_v34 = vadd.f32 %v1799_v10, %v489_v0  ;;  %v466_v27 = vmul.f32 %v1285_v59, %v1728_v12 }
 0x161   :  { %1061 = vmatmul.mubr.msk.bf16.gmra.mxu1 %vm53_vm0, %v561_v60  ;;  %v451_v6 = vmul.f32 %v1287_v32, %v1739_v45  ;;  %v543_v39 = vadd.f32 %v1799_v10, %v504_v35 }
 0x162   :  { %1300 = vrsqrt.f32 %v406_v51  ;;  %v554_v38 = vpack.c.bf16 %v528_v34, %v527_v61  ;;  %799 = vmatprep.mubr.bf16.mxu1 %v1324_v16  ;;  %v505_v13 = vmul.f32 %v1792_v44, %v466_v27 }
 0x163   :  { %v1289_v25 = vpop.eup %1288  ;;  %v490_v36 = vmul.f32 %v1792_v44, %v451_v6 }
 0x164   :  { %v1291_v2 = vpop.eup %1290  ;;  %1054 = vmatmul.mubr.msk.bf16.gmra.mxu0 %vm53_vm0, %v554_v38  ;;  %v544_v12 = vadd.f32 %v1799_v10, %v505_v13  ;;  %v452_v42 = vmul.f32 %v1289_v25, %v1742_v30 }
 0x165   :  { %729 = vmatprep.mubr.bf16.mxu0 %v1324_v16  ;;  %v467_v45 = vmul.f32 %v1291_v2, %v1751_v20  ;;  %v529_v37 = vadd.f32 %v1799_v10, %v490_v36 }
 0x166   :  { %v562_v15 = vpack.c.bf16 %v544_v12, %v543_v39  ;;  %v491_v48 = vmul.f32 %v1792_v44, %v452_v42 }
 0x167   :  { %v1293_v1 = vpop.eup %1292  ;;  %v506_v54 = vmul.f32 %v1792_v44, %v467_v45 }
 0x168   :  { %v1295_v46 = vpop.eup %1294  ;;  %v530_v47 = vadd.f32 %v1799_v10, %v491_v48  ;;  %v468_v5 = vmul.f32 %v1293_v1, %v1754_v49 }
 0x169   :  { %1062 = vmatmul.mubr.msk.bf16.gmra.mxu1 %vm53_vm0, %v562_v15  ;;  %v453_v30 = vmul.f32 %v1295_v46, %v1763_v62  ;;  %v545_v24 = vadd.f32 %v1799_v10, %v506_v54 }
 0x16a   :  { %v555_v8 = vpack.c.bf16 %v530_v47, %v529_v37  ;;  %809 = vmatprep.mubr.bf16.mxu1 %v1324_v16  ;;  %v507_v20 = vmul.f32 %v1792_v44, %v468_v5 }
 0x16b   :  { %v1297_v58 = vpop.eup %1296  ;;  %v492_v52 = vmul.f32 %v1792_v44, %v453_v30 }
 0x16c   :  { %v1299_v29 = vpop.eup %1298  ;;  %1055 = vmatmul.mubr.msk.bf16.gmra.mxu0 %vm53_vm0, %v555_v8  ;;  %v546_v17 = vadd.f32 %v1799_v10, %v507_v20  ;;  %v454_v49 = vmul.f32 %v1297_v58, %v1766_v53 }
 0x16d   :  { %739 = vmatprep.mubr.bf16.mxu0 %v1324_v16  ;;  %v469_v62 = vmul.f32 %v1299_v29, %v1775_v18  ;;  %v531_v26 = vadd.f32 %v1799_v10, %v492_v52 }
 0x16e   :  { %v563_v55 = vpack.c.bf16 %v546_v17, %v545_v24  ;;  %v493_v40 = vmul.f32 %v1792_v44, %v454_v49 }
 0x16f   :  { %v1301_v31 = vpop.eup %1300  ;;  %v508_v3 = vmul.f32 %v1792_v44, %v469_v62 }
 0x170   :  { %v532_v43 = vadd.f32 %v1799_v10, %v493_v40  ;;  %v470_v63 = vmul.f32 %v1301_v31, %v1778_v57 }
 0x171   :  { %1063 = vmatmul.mubr.msk.bf16.gmra.mxu1 %vm53_vm0, %v563_v55  ;;  %v547_v18 = vadd.f32 %v1799_v10, %v508_v3 }
 0x172   :  { %v556_v53 = vpack.c.bf16 %v532_v43, %v531_v26  ;;  %819 = vmatprep.mubr.bf16.mxu1 %v1324_v16  ;;  %v509_v41 = vmul.f32 %v1792_v44, %v470_v63 }
 0x174   :  { %1056 = vmatmul.mubr.msk.bf16.gmra.mxu0 %vm53_vm0, %v556_v53  ;;  %v548_v4 = vadd.f32 %v1799_v10, %v509_v41 }
 0x176   :  { %v564_v14 = vpack.c.bf16 %v548_v4, %v547_v18 }
 0x179   :  { %1064 = vmatmul.mubr.msk.bf16.gmra.mxu1 %vm53_vm0, %v564_v14 }
 0x1fc   :  { %v671_v11 = vpop.f32.mrf.mxu0 }
 0x1fe   :  { %v673_v57 = vpop.f32.mrf.mxu0 }
 0x1ff   :  { %991 = vst.msk [vmem:[%s2060_s5] sm:$0xff] %vm990_vm1, %v673_v57 }
 0x200   :  { %v675_v16 = vpop.f32.mrf.mxu0 }
 0x201   :  { %v1132_v33 = vpack.c.bf16 %v675_v16, %v671_v11  ;;  %v751_v44 = vpop.f32.mrf.mxu1 }
 0x202   :  { %v677_v9 = vpop.f32.mrf.mxu0 }
 0x203   :  { %1133 = vst [vmem:[#allocation2] sm:$0xff] %v1132_v33   ;;  %992 = vst.msk [vmem:[%s2060_s5 + $0x8] sm:$0xff] %vm990_vm1, %v677_v9  ;;  %v753_v10 = vpop.f32.mrf.mxu1 }
 0x204   :  { %1007 = vst.msk [vmem:[%s2060_s5 + $0x80] sm:$0xff] %vm990_vm1, %v753_v10  ;;  %v681_v28 = vpop.f32.mrf.mxu0 }
 0x205   :  { %v755_v56 = vpop.f32.mrf.mxu1 }
 0x206   :  { %v1172_v21 = vpack.c.bf16 %v755_v56, %v751_v44  ;;  %v683_v50 = vpop.f32.mrf.mxu0 }
 0x207   :  { %993 = vst.msk [vmem:[%s2060_s5 + $0x10] sm:$0xff] %vm990_vm1, %v683_v50  ;;  %v757_v19 = vpop.f32.mrf.mxu1 }
 0x208   :  { %1216 = vst [vmem:[#allocation2 + $0x40] sm:$0xff] %v1172_v21   ;;  %1008 = vst.msk [vmem:[%s2060_s5 + $0x88] sm:$0xff] %vm990_vm1, %v757_v19  ;;  %v685_v22 = vpop.f32.mrf.mxu0 }
 0x209   :  { %v1137_v7 = vpack.c.bf16 %v685_v22, %v681_v28  ;;  %v761_v23 = vpop.f32.mrf.mxu1 }
 0x20a   :  { %v687_v0 = vpop.f32.mrf.mxu0 }
 0x20b   :  { %1209 = vst [vmem:[#allocation2 + $0x8] sm:$0xff] %v1137_v7   ;;  %994 = vst.msk [vmem:[%s2060_s5 + $0x18] sm:$0xff] %vm990_vm1, %v687_v0  ;;  %v763_v59 = vpop.f32.mrf.mxu1 }
 0x20c   :  { %1009 = vst.msk [vmem:[%s2060_s5 + $0x90] sm:$0xff] %vm990_vm1, %v763_v59  ;;  %v691_v60 = vpop.f32.mrf.mxu0 }
 0x20d   :  { %v765_v61 = vpop.f32.mrf.mxu1 }
 0x20e   :  { %v1177_v32 = vpack.c.bf16 %v765_v61, %v761_v23  ;;  %v693_v51 = vpop.f32.mrf.mxu0 }
 0x20f   :  { %995 = vst.msk [vmem:[%s2060_s5 + $0x20] sm:$0xff] %vm990_vm1, %v693_v51  ;;  %v767_v34 = vpop.f32.mrf.mxu1 }
 0x210   :  { %1217 = vst [vmem:[#allocation2 + $0x48] sm:$0xff] %v1177_v32   ;;  %1010 = vst.msk [vmem:[%s2060_s5 + $0x98] sm:$0xff] %vm990_vm1, %v767_v34  ;;  %v695_v27 = vpop.f32.mrf.mxu0 }
 0x211   :  { %v1142_v35 = vpack.c.bf16 %v695_v27, %v691_v60  ;;  %v771_v6 = vpop.f32.mrf.mxu1 }
 0x212   :  { %v697_v38 = vpop.f32.mrf.mxu0 }
 0x213   :  { %1210 = vst [vmem:[#allocation2 + $0x10] sm:$0xff] %v1142_v35   ;;  %996 = vst.msk [vmem:[%s2060_s5 + $0x28] sm:$0xff] %vm990_vm1, %v697_v38  ;;  %v773_v13 = vpop.f32.mrf.mxu1 }
 0x214   :  { %1011 = vst.msk [vmem:[%s2060_s5 + $0xa0] sm:$0xff] %vm990_vm1, %v773_v13  ;;  %v701_v25 = vpop.f32.mrf.mxu0 }
 0x215   :  { %v775_v2 = vpop.f32.mrf.mxu1 }
 0x216   :  { %v1182_v39 = vpack.c.bf16 %v775_v2, %v771_v6  ;;  %v703_v12 = vpop.f32.mrf.mxu0 }
 0x217   :  { %997 = vst.msk [vmem:[%s2060_s5 + $0x30] sm:$0xff] %vm990_vm1, %v703_v12  ;;  %v777_v42 = vpop.f32.mrf.mxu1 }
 0x218   :  { %1218 = vst [vmem:[#allocation2 + $0x50] sm:$0xff] %v1182_v39   ;;  %1012 = vst.msk [vmem:[%s2060_s5 + $0xa8] sm:$0xff] %vm990_vm1, %v777_v42  ;;  %v705_v36 = vpop.f32.mrf.mxu0 }
 0x219   :  { %v1147_v45 = vpack.c.bf16 %v705_v36, %v701_v25  ;;  %v781_v15 = vpop.f32.mrf.mxu1 }
 0x21a   :  { %v707_v48 = vpop.f32.mrf.mxu0 }
 0x21b   :  { %1211 = vst [vmem:[#allocation2 + $0x18] sm:$0xff] %v1147_v45   ;;  %998 = vst.msk [vmem:[%s2060_s5 + $0x38] sm:$0xff] %vm990_vm1, %v707_v48  ;;  %v783_v1 = vpop.f32.mrf.mxu1 }
 0x21c   :  { %1013 = vst.msk [vmem:[%s2060_s5 + $0xb0] sm:$0xff] %vm990_vm1, %v783_v1  ;;  %v711_v46 = vpop.f32.mrf.mxu0 }
 0x21d   :  { %v785_v37 = vpop.f32.mrf.mxu1 }
 0x21e   :  { %v1187_v47 = vpack.c.bf16 %v785_v37, %v781_v15  ;;  %v713_v5 = vpop.f32.mrf.mxu0 }
 0x21f   :  { %999 = vst.msk [vmem:[%s2060_s5 + $0x40] sm:$0xff] %vm990_vm1, %v713_v5  ;;  %v787_v54 = vpop.f32.mrf.mxu1 }
 0x220   :  { %1219 = vst [vmem:[#allocation2 + $0x58] sm:$0xff] %v1187_v47   ;;  %1014 = vst.msk [vmem:[%s2060_s5 + $0xb8] sm:$0xff] %vm990_vm1, %v787_v54  ;;  %v715_v30 = vpop.f32.mrf.mxu0 }
 0x221   :  { %v1152_v8 = vpack.c.bf16 %v715_v30, %v711_v46  ;;  %v791_v20 = vpop.f32.mrf.mxu1 }
 0x222   :  { %v717_v58 = vpop.f32.mrf.mxu0 }
 0x223   :  { %1212 = vst [vmem:[#allocation2 + $0x20] sm:$0xff] %v1152_v8   ;;  %1000 = vst.msk [vmem:[%s2060_s5 + $0x48] sm:$0xff] %vm990_vm1, %v717_v58  ;;  %v793_v29 = vpop.f32.mrf.mxu1 }
 0x224   :  { %1015 = vst.msk [vmem:[%s2060_s5 + $0xc0] sm:$0xff] %vm990_vm1, %v793_v29  ;;  %v721_v24 = vpop.f32.mrf.mxu0 }
 0x225   :  { %v795_v17 = vpop.f32.mrf.mxu1 }
 0x226   :  { %v1192_v49 = vpack.c.bf16 %v795_v17, %v791_v20  ;;  %v723_v52 = vpop.f32.mrf.mxu0 }
 0x227   :  { %1001 = vst.msk [vmem:[%s2060_s5 + $0x50] sm:$0xff] %vm990_vm1, %v723_v52  ;;  %v797_v62 = vpop.f32.mrf.mxu1 }
 0x228   :  { %1220 = vst [vmem:[#allocation2 + $0x60] sm:$0xff] %v1192_v49   ;;  %1016 = vst.msk [vmem:[%s2060_s5 + $0xc8] sm:$0xff] %vm990_vm1, %v797_v62  ;;  %v725_v55 = vpop.f32.mrf.mxu0 }
 0x229   :  { %v1157_v40 = vpack.c.bf16 %v725_v55, %v721_v24  ;;  %v801_v31 = vpop.f32.mrf.mxu1 }
 0x22a   :  { %v727_v26 = vpop.f32.mrf.mxu0 }
 0x22b   :  { %1213 = vst [vmem:[#allocation2 + $0x28] sm:$0xff] %v1157_v40   ;;  %1002 = vst.msk [vmem:[%s2060_s5 + $0x58] sm:$0xff] %vm990_vm1, %v727_v26  ;;  %v803_v43 = vpop.f32.mrf.mxu1 }
 0x22c   :  { %1017 = vst.msk [vmem:[%s2060_s5 + $0xd0] sm:$0xff] %vm990_vm1, %v803_v43  ;;  %v731_v63 = vpop.f32.mrf.mxu0 }
 0x22d   :  { %v805_v3 = vpop.f32.mrf.mxu1 }
 0x22e   :  { %v1197_v53 = vpack.c.bf16 %v805_v3, %v801_v31  ;;  %v733_v41 = vpop.f32.mrf.mxu0 }
 0x22f   :  { %1003 = vst.msk [vmem:[%s2060_s5 + $0x60] sm:$0xff] %vm990_vm1, %v733_v41  ;;  %v807_v18 = vpop.f32.mrf.mxu1 }
 0x230   :  { %1221 = vst [vmem:[#allocation2 + $0x68] sm:$0xff] %v1197_v53   ;;  %1018 = vst.msk [vmem:[%s2060_s5 + $0xd8] sm:$0xff] %vm990_vm1, %v807_v18  ;;  %v735_v4 = vpop.f32.mrf.mxu0 }
 0x231   :  { %v1162_v14 = vpack.c.bf16 %v735_v4, %v731_v63  ;;  %v811_v11 = vpop.f32.mrf.mxu1 }
 0x232   :  { %v737_v57 = vpop.f32.mrf.mxu0 }
 0x233   :  { %1214 = vst [vmem:[#allocation2 + $0x30] sm:$0xff] %v1162_v14   ;;  %1004 = vst.msk [vmem:[%s2060_s5 + $0x68] sm:$0xff] %vm990_vm1, %v737_v57  ;;  %v813_v16 = vpop.f32.mrf.mxu1 }
 0x234   :  { %1019 = vst.msk [vmem:[%s2060_s5 + $0xe0] sm:$0xff] %vm990_vm1, %v813_v16  ;;  %v741_v33 = vpop.f32.mrf.mxu0 }
 0x235   :  { %v815_v44 = vpop.f32.mrf.mxu1 }
 0x236   :  { %v1202_v9 = vpack.c.bf16 %v815_v44, %v811_v11  ;;  %v743_v10 = vpop.f32.mrf.mxu0 }
 0x237   :  { %1005 = vst.msk [vmem:[%s2060_s5 + $0x70] sm:$0xff] %vm990_vm1, %v743_v10  ;;  %v817_v28 = vpop.f32.mrf.mxu1 }
 0x238   :  { %1222 = vst [vmem:[#allocation2 + $0x70] sm:$0xff] %v1202_v9   ;;  %1020 = vst.msk [vmem:[%s2060_s5 + $0xe8] sm:$0xff] %vm990_vm1, %v817_v28  ;;  %v745_v56 = vpop.f32.mrf.mxu0 }
 0x239   :  { %v1167_v21 = vpack.c.bf16 %v745_v56, %v741_v33  ;;  %v821_v50 = vpop.f32.mrf.mxu1 }
 0x23a   :  { %v747_v19 = vpop.f32.mrf.mxu0 }
 0x23b   :  { %1215 = vst [vmem:[#allocation2 + $0x38] sm:$0xff] %v1167_v21   ;;  %1006 = vst.msk [vmem:[%s2060_s5 + $0x78] sm:$0xff] %vm990_vm1, %v747_v19  ;;  %v823_v22 = vpop.f32.mrf.mxu1 }
 0x23c   :  { %1021 = vst.msk [vmem:[%s2060_s5 + $0xf0] sm:$0xff] %vm990_vm1, %v823_v22 }
 0x23d   :  { %v825_v7 = vpop.f32.mrf.mxu1 }
 0x23e   :  { %v1207_v23 = vpack.c.bf16 %v825_v7, %v821_v50 }
 0x23f   :  { %v827_v0 = vpop.f32.mrf.mxu1 }
 0x240   :  { %1223 = vst [vmem:[#allocation2 + $0x78] sm:$0xff] %v1207_v23   ;;  %1022 = vst.msk [vmem:[%s2060_s5 + $0xf8] sm:$0xff] %vm990_vm1, %v827_v0 }
 0x241   :  { %1313 = shalt.err (!%p1310_p4)
}
 0x242   :  { %s1326_s24 = smov 64   ;;  %s1327_s25 = smov 4  }
 0x243   :  { %1034 = dma.vmem_to_hbm [thread:$0]  %s1029_s2, 2048, %s2059_s4, [#allocation3], %s1326_s24, %s1326_s24, %s1327_s25  }
 0x244   :  { %1322 = dma.done.wait [#allocation3], 2048  }
 0x245   :  { %1323 = vsyncadd [#allocation3], 4294965248 }
 0x246   :  { %1042 = vsyncpa [#allocation3], 1 }

</bundles_post_ra>
